<compile_context>
chip_gen: v7x
topology: tpu7x:2x2x1
jax: 0.10.0
libtpu: 0.0.40
codegen_flags: <defaults>
</compile_context>

<pallas_src>
import jax
import jax.numpy as jnp
from jax.experimental import pallas as pl
from jax.experimental.pallas import tpu as pltpu


def _round_up(x, m):
    return (x + m - 1) // m * m


def _pick_tile(padded_size, max_tile):
    """Largest multiple of 128 that divides `padded_size` and is <= max_tile."""
    max_tile = max(128, (max_tile // 128) * 128)
    t = min(max_tile, padded_size)
    while padded_size % t:
        t -= 128
    return t


# ----------------------------------------------------------------------------
# Fused hot path: tiled projection + L2 norm + similarity.
#   x: (Np, Pp) mxu_dtype    w: (Pp, Dp) mxu_dtype    q: (Q, Dp) f32 (normalized)
#   out sim: (Q, Np) f32     (lane-dense; transposed to (N, Q) in the wrapper)
# grid = (Np // tile_n, Pp // tile_k); K is the reduction (innermost) axis.
# ----------------------------------------------------------------------------
def _fused_proj_norm_sim_kernel(x_ref, w_ref, q_ref, sim_ref, acc_ref):
    k = pl.program_id(1)

    @pl.when(k == 0)
    def _():
        acc_ref[...] = jnp.zeros_like(acc_ref)

    # Partial projection; inputs arrive already in the MXU dtype, accumulate f32.
    acc_ref[...] += jnp.dot(x_ref[...], w_ref[...],
                            preferred_element_type=jnp.float32)

    @pl.when(k == pl.num_programs(1) - 1)
    def _():
        y = acc_ref[...]                                        # (tile_n, Dp) f32
        inv = jax.lax.rsqrt(jnp.sum(y * y, axis=-1, keepdims=True) + 1e-12)
        y_n = y * inv                                           # normalized rows
        # sim block (Q, tile_n): contract the D axes directly (no transpose),
        # lane-dense output.  Q is tiny, and this runs once per N tile.
        sim_ref[...] = jax.lax.dot_general(
            q_ref[...], y_n,
            dimension_numbers=(((1,), (1,)), ((), ())),
            preferred_element_type=jnp.float32,
        ).astype(sim_ref.dtype)


def fused_retrieval_sim(x, w, q, *, tile_n=1024, tile_k=2048):
    """sim = l2norm(x @ w) @ q.T  in one tiled pallas_call.

    x: (N, P) flattened images (MXU dtype), w: (P, Dp) projection (Dp%128==0,
    MXU dtype), q: (Q, Dp) f32 normalized query embedding.  Returns (N, Q) f32.
    """
    N, P = x.shape
    Pw, D = w.shape
    Q, Dq = q.shape
    assert P == Pw and D == Dq and D % 128 == 0

    # Pad to 128 granularity (waste < 1 row/col of 128), then choose tiles that
    # divide the padded sizes exactly.
    n_pad = _round_up(N, 128)
    p_pad = _round_up(P, 128)
    # Cap tile_n at n_pad // 2 when possible so grid[0] >= 2 (megacore split).
    tile_n = _pick_tile(n_pad, min(tile_n, n_pad // 2 if n_pad >= 256 else n_pad))
    tile_k = _pick_tile(p_pad, tile_k)

    # Zero-pad so every block is full (zero rows/cols contribute nothing to the
    # matmul; padded image rows produce sim == 0 and are sliced off).
    if n_pad != N or p_pad != P:
        x = jnp.pad(x, ((0, n_pad - N), (0, p_pad - P)))
    if p_pad != P:
        w = jnp.pad(w, ((0, p_pad - P), (0, 0)))

    grid = (n_pad // tile_n, p_pad // tile_k)

    # Working set (double-buffered inputs/outputs + resident accumulator),
    # kept under v7x's scoped-VMEM budget.
    x_bytes = tile_n * tile_k * x.dtype.itemsize
    w_bytes = tile_k * D * w.dtype.itemsize
    acc_bytes = tile_n * D * 4
    small = Q * D * 4 + Q * tile_n * 4
    needed = 2 * (x_bytes + w_bytes + small) + acc_bytes
    vmem_limit = int(min(max(needed + (8 << 20), 32 << 20), 48 << 20))

    cost = pl.CostEstimate(
        flops=int(2 * n_pad * p_pad * D + 2 * n_pad * D * Q),
        transcendentals=int(n_pad),  # one rsqrt per output row
        bytes_accessed=int(
            x.size * x.dtype.itemsize
            + grid[0] * w.size * w.dtype.itemsize   # w re-fetched per N tile
            + q.size * 4
            + Q * n_pad * 4
        ),
    )

    # TODO(synk): on v6e/v5e (128 MiB VMEM) w could be made fully VMEM-resident
    # (single constant-index block) to eliminate the re-fetch stream; not done
    # here to keep one config that also fits v7x's 64 MiB.
    sim_qn = pl.pallas_call(
        _fused_proj_norm_sim_kernel,
        out_shape=jax.ShapeDtypeStruct((Q, n_pad), jnp.float32),
        grid_spec=pltpu.PrefetchScalarGridSpec(
            num_scalar_prefetch=0,
            grid=grid,
            in_specs=[
                pl.BlockSpec((tile_n, tile_k), lambda i, k: (i, k)),
                pl.BlockSpec((tile_k, D), lambda i, k: (k, 0)),
                pl.BlockSpec((Q, D), lambda i, k: (0, 0)),
            ],
            out_specs=pl.BlockSpec((Q, tile_n), lambda i, k: (0, i)),
            scratch_shapes=[pltpu.VMEM((tile_n, D), jnp.float32)],
        ),
        compiler_params=pltpu.CompilerParams(
            dimension_semantics=("parallel", "arbitrary"),
            vmem_limit_bytes=vmem_limit,
        ),
        cost_estimate=cost,
    )(x, w, q)

    # (Q, n_pad) -> drop padded rows, present as adv_embeds @ query.T = (N, Q).
    return sim_qn[:, :N].T


# ----------------------------------------------------------------------------
# Retriever wrapper (mirrors Retriever.forward)
# ----------------------------------------------------------------------------
class RetrieverPallas:
    """CLIP-like retriever: visual/textual embeddings + cosine-space matmul."""

    def __init__(self, img_feat_dim, txt_feat_dim, embed_dim=32, seed=0,
                 mxu_dtype=jnp.bfloat16):
        self.embed_dim = embed_dim
        self.mxu_dtype = mxu_dtype
        # Lane-dense embedding dim: zero-padding the projection columns to a
        # multiple of 128 is mathematically identical (padded dims are 0 in
        # both towers, so norms and dot products are unchanged) but gives full
        # vreg lanes, unmasked stores and better MXU column utilization.
        self.d_pad = _round_up(embed_dim, 128)

        kv, kt = jax.random.split(jax.random.PRNGKey(seed))
        wv = jax.random.normal(kv, (img_feat_dim, embed_dim), jnp.float32)
        wv = wv / jnp.sqrt(img_feat_dim)
        wt = jax.random.normal(kt, (txt_feat_dim, embed_dim), jnp.float32)
        wt = wt / jnp.sqrt(txt_feat_dim)
        # Weights stored once in the MXU dtype (bf16 on v6e/v7x/v5e, f32 for
        # strict-precision checks) — no per-step casts inside the kernel.
        self.w_visual = jnp.pad(
            wv, ((0, 0), (0, self.d_pad - embed_dim))).astype(mxu_dtype)
        self.w_text = jnp.pad(
            wt, ((0, 0), (0, self.d_pad - embed_dim))).astype(mxu_dtype)
        # TODO(synk): the full CLIP/BLIP transformer backbones are external
        # pretrained models with no clean in-script Pallas equivalent; they are
        # replaced by a single linear projection + L2-norm head per modality.

    def extract_textual_features(self, token_embeds):
        # token_embeds: (Q, T, H) -> mean-pool over tokens (glue), project+norm.
        # Tiny matvec: plain jnp (a dedicated kernel launch is pure overhead).
        pooled = jnp.mean(token_embeds.astype(jnp.float32), axis=1)
        t = jnp.dot(pooled, self.w_text.astype(jnp.float32),
                    precision=jax.lax.Precision.HIGHEST)
        t = t * jax.lax.rsqrt(jnp.sum(t * t, axis=-1, keepdims=True) + 1e-12)
        return t                                                  # (Q, Dp) f32

    def forward(self, query_tokens, images_nchw):
        # layout: NCHW -> flatten to (N, C*H*W), feature axis last (lane axis).
        # Feed x in the MXU dtype (bf16 halves the dominant HBM stream).
        n = images_nchw.shape[0]
        flat = images_nchw.reshape(n, -1).astype(self.mxu_dtype)     # (N, P)
        query_embedding = self.extract_textual_features(query_tokens)  # (Q, Dp)
        # Visual projection + L2 norm + similarity fused in one tiled kernel
        # (the normalized adv_embeds are never written back to HBM).
        sim = fused_retrieval_sim(flat, self.w_visual, query_embedding)  # (N, Q)
        return sim


if __name__ == "__main__":
    key = jax.random.PRNGKey(0)
    k_img, k_txt = jax.random.split(key)

    # Small, deterministic example inputs.
    n_imgs, C, H, W = 4, 3, 16, 16
    T, Hdim = 8, 32          # query token sequence length, token hidden size
    embed_dim = 32

    images = jax.random.normal(k_img, (n_imgs, C, H, W), jnp.float32)  # NCHW
    query_tokens = jax.random.normal(k_txt, (1, T, Hdim), jnp.float32)

    # Plain-JAX f32 reference (highest matmul precision) — uses f32 weights.
    def reference(retr):
        wv = retr.w_visual.astype(jnp.float32)
        wt = retr.w_text.astype(jnp.float32)
        flat = images.reshape(n_imgs, -1)
        v = jnp.dot(flat, wv, precision=jax.lax.Precision.HIGHEST)
        v = v * jax.lax.rsqrt(jnp.sum(v * v, axis=-1, keepdims=True) + 1e-12)
        t = jnp.dot(jnp.mean(query_tokens, axis=1), wt,
                    precision=jax.lax.Precision.HIGHEST)
        t = t * jax.lax.rsqrt(jnp.sum(t * t, axis=-1, keepdims=True) + 1e-12)
        return jnp.dot(v, t.T, precision=jax.lax.Precision.HIGHEST)

    # f32 MXU path (tight correctness check / strict-precision config).
    retr_f32 = RetrieverPallas(C * H * W, Hdim, embed_dim, seed=0,
                               mxu_dtype=jnp.float32)
    sim_f32 = jax.block_until_ready(retr_f32.forward(query_tokens, images))
    ref = reference(retr_f32)
    assert sim_f32.shape == (n_imgs, 1), sim_f32.shape
    assert jnp.allclose(sim_f32, ref, atol=2e-3), (sim_f32, ref)

    # bf16 MXU path (recommended on all generations; f32 accumulation).
    retr_bf16 = RetrieverPallas(C * H * W, Hdim, embed_dim, seed=0,
                                mxu_dtype=jnp.bfloat16)
    sim_bf16 = jax.block_until_ready(retr_bf16.forward(query_tokens, images))
    assert sim_bf16.shape == (n_imgs, 1), sim_bf16.shape
    assert jnp.allclose(sim_bf16, ref, atol=5e-2), (sim_bf16, ref)

    print("KERNEL_OK")
</pallas_src>

<mosaic_0001>
module attributes {stable_mosaic.version = 11 : i64} {
  func.func @_fused_proj_norm_sim_kernel(%arg0: i32, %arg1: i32, %arg2: memref<128x768xf32, #tpu.memory_space<vmem>>, %arg3: memref<768x128xf32, #tpu.memory_space<vmem>>, %arg4: memref<1x128xf32, #tpu.memory_space<vmem>>, %arg5: memref<1x128xf32, #tpu.memory_space<vmem>>, %arg6: memref<128x128xf32, #tpu.memory_space<vmem>>) attributes {dimension_semantics = [#tpu.dimension_semantics<parallel>, #tpu.dimension_semantics<arbitrary>], iteration_bounds = array<i64: 1, 1>, scalar_prefetch = 0 : i64, scratch_operands = 1 : i64, tpu.core_type = #tpu.core_type<tc>, window_params = [{transform_indices = @transform_0, window_bounds = array<i64: 128, 768>}, {transform_indices = @transform_1, window_bounds = array<i64: 768, 128>}, {pipeline_mode = #tpu.pipeline_mode<synchronous>, transform_indices = @transform_2, window_bounds = array<i64: 1, 128>}, {transform_indices = @transform_3, window_bounds = array<i64: 1, 128>}]} {
    %c0_i32 = arith.constant 0 : i32
    %0 = arith.cmpi eq, %arg1, %c0_i32 : i32
    %1 = arith.extui %0 : i1 to i32
    %c0_i32_0 = arith.constant 0 : i32
    %2 = arith.cmpi ne, %1, %c0_i32_0 : i32
    scf.if %2 {
      %cst_10 = arith.constant 0.000000e+00 : f32
      %12 = vector.broadcast %cst_10 : f32 to vector<128x128xf32>
      %c0_11 = arith.constant 0 : index
      %c0_12 = arith.constant 0 : index
      %13 = vector.load %arg6[%c0_11, %c0_12] : memref<128x128xf32, #tpu.memory_space<vmem>>, vector<128x128xf32>
      tpu.vector_store %arg6[%c0_11, %c0_12], %12 {strides = array<i32>} : memref<128x128xf32, #tpu.memory_space<vmem>>, vector<128x128xf32>,
    } else {
    }
    %c0 = arith.constant 0 : index
    %c0_1 = arith.constant 0 : index
    %3 = vector.load %arg6[%c0, %c0_1] : memref<128x128xf32, #tpu.memory_space<vmem>>, vector<128x128xf32>
    %c0_2 = arith.constant 0 : index
    %c0_3 = arith.constant 0 : index
    %4 = vector.load %arg2[%c0_2, %c0_3] : memref<128x768xf32, #tpu.memory_space<vmem>>, vector<128x768xf32>
    %c0_4 = arith.constant 0 : index
    %c0_5 = arith.constant 0 : index
    %5 = vector.load %arg3[%c0_4, %c0_5] : memref<768x128xf32, #tpu.memory_space<vmem>>, vector<768x128xf32>
    %cst = arith.constant dense<0.000000e+00> : vector<128x128xf32>
    %6 = tpu.matmul %4, %5, %cst {dimension_numbers = #tpu.dot_dimension_numbers<[1], [0], [0], [1], [0, 0, 1, 1], [], []>} : vector<128x768xf32>, vector<768x128xf32>, vector<128x128xf32> -> vector<128x128xf32>
    %7 = arith.addf %3, %6 : vector<128x128xf32>
    %c0_6 = arith.constant 0 : index
    %c0_7 = arith.constant 0 : index
    %8 = vector.load %arg6[%c0_6, %c0_7] : memref<128x128xf32, #tpu.memory_space<vmem>>, vector<128x128xf32>
    tpu.vector_store %arg6[%c0_6, %c0_7], %7 {strides = array<i32>} : memref<128x128xf32, #tpu.memory_space<vmem>>, vector<128x128xf32>,
    %c0_i32_8 = arith.constant 0 : i32
    %9 = arith.cmpi eq, %arg1, %c0_i32_8 : i32
    %10 = arith.extui %9 : i1 to i32
    %c0_i32_9 = arith.constant 0 : i32
    %11 = arith.cmpi ne, %10, %c0_i32_9 : i32
    scf.if %11 {
      %c0_10 = arith.constant 0 : index
      %c0_11 = arith.constant 0 : index
      %12 = vector.load %arg6[%c0_10, %c0_11] : memref<128x128xf32, #tpu.memory_space<vmem>>, vector<128x128xf32>
      %13 = arith.mulf %12, %12 : vector<128x128xf32>
      %cst_12 = arith.constant dense<0.000000e+00> : vector<128xf32>
      %14 = vector.multi_reduction <add>, %13, %cst_12 [1] : vector<128x128xf32> to vector<128xf32>
      %15 = vector.shape_cast %14 : vector<128xf32> to vector<128x1xf32>
      %cst_13 = arith.constant 9.99999996E-13 : f32
      %16 = vector.broadcast %cst_13 : f32 to vector<128x1xf32>
      %17 = arith.addf %15, %16 : vector<128x1xf32>
      %18 = math.rsqrt %17 : vector<128x1xf32>
      %19 = vector.broadcast %18 : vector<128x1xf32> to vector<128x128xf32>
      %20 = arith.mulf %12, %19 : vector<128x128xf32>
      %c0_14 = arith.constant 0 : index
      %c0_15 = arith.constant 0 : index
      %21 = vector.load %arg4[%c0_14, %c0_15] : memref<1x128xf32, #tpu.memory_space<vmem>>, vector<1x128xf32>
      %cst_16 = arith.constant dense<0.000000e+00> : vector<1x128xf32>
      %22 = tpu.matmul %21, %20, %cst_16 {dimension_numbers = #tpu.dot_dimension_numbers<[1], [1], [0], [0], [0, 0, 1, 0], [], []>} : vector<1x128xf32>, vector<128x128xf32>, vector<1x128xf32> -> vector<1x128xf32>
      %c0_17 = arith.constant 0 : index
      %c0_18 = arith.constant 0 : index
      %23 = vector.load %arg5[%c0_17, %c0_18] : memref<1x128xf32, #tpu.memory_space<vmem>>, vector<1x128xf32>
      tpu.vector_store %arg5[%c0_17, %c0_18], %22 {strides = array<i32>} : memref<1x128xf32, #tpu.memory_space<vmem>>, vector<1x128xf32>,
    } else {
    }
    return
  }
  func.func @transform_0(%arg0: i32, %arg1: i32) -> (i32, i32) {
    %c0_i32 = arith.constant 0 : i32
    return %arg0, %arg1 : i32, i32
  }
  func.func @transform_1(%arg0: i32, %arg1: i32) -> (i32, i32) {
    %c0_i32 = arith.constant 0 : i32
    %c0_i32_0 = arith.constant 0 : i32
    return %arg1, %c0_i32 : i32, i32
  }
  func.func @transform_2(%arg0: i32, %arg1: i32) -> (i32, i32) {
    %c0_i32 = arith.constant 0 : i32
    %c0_i32_0 = arith.constant 0 : i32
    %c0_i32_1 = arith.constant 0 : i32
    return %c0_i32, %c0_i32_0 : i32, i32
  }
  func.func @transform_3(%arg0: i32, %arg1: i32) -> (i32, i32) {
    %c0_i32 = arith.constant 0 : i32
    %c0_i32_0 = arith.constant 0 : i32
    return %c0_i32, %arg0 : i32, i32
  }
}

</mosaic_0001>

<bundles_post_ra>
// kernel: tpu_custom_call.1
= control target key start
LH: loop header
LB: loop body
LE: loop exit
PB: predicated region body
PF: predicated region fallthrough
CT: control target
= control target key end

     0   :  { %8 = vsyncpa [#allocation4], 0  ;;  %s1676_s0 = inlined_call_operand.hbm [shape: f32[128,768], index: 0, kind: input, shape index: {}]   ;;  %s1677_s1 = inlined_call_operand.hbm [shape: f32[768,128], index: 1, kind: input, shape index: {}]   ;;  %s1678_s2 = inlined_call_operand.vmem [shape: f32[1,128], index: 2, kind: input, shape index: {}]   ;;  %s1679_s3 = inlined_call_operand.hbm [shape: f32[1,128], index: 3, kind: output, shape index: {}]  }
   0x1   :  { %9 = vsyncpa [#allocation7], 0 }
   0x2   :  { %10 = vsyncpa [#allocation5], 0  ;;  %s1483_s12 = smov [#allocation3]   ;;  %s1411_s16 = scalar_lea.hbm %s1676_s0, 12288 }
   0x3   :  { %s16_s13 = sshll.u32 %s1483_s12, 4  ;;  %p1412_p0 = scmp.ne.s32.totalorder %s1676_s0, %s1411_s16  ;;  %s17_s13 = int_to_ptr.vmem [resolvable:$true] %s16_s13 }
   0x4   :  { %p1415_p1 = scmp.lt.u32.totalorder %s1411_s16, %s1676_s0 }
   0x6   :  { %p1417_p2 = pnand %p1415_p1, %p1412_p0 }
   0x8   :  { %1420 = shalt.err (!%p1417_p2)
}
   0x9   :  { %s1421_s21 = scalar_lea.vmem %s17_s13, 12288  ;;  %p1426_p4 = scmp.lt.s32.totalorder %s17_s13, %s17_s13 }
   0xa   :  { %p1422_p3 = scmp.ne.s32.totalorder %s17_s13, %s1421_s21  ;;  %p1427_p5 = scmp.lt.s32.totalorder %s1421_s21, %s1421_s21 }
   0xc   :  { %p1428_p6 = por %p1427_p5, %p1426_p4 }
   0xe   :  { %p1429_p7 = pnand %p1428_p6, %p1422_p3 }
  0x10   :  { %1432 = shalt.err (!%p1429_p7)
}
  0x11   :  { %s1484_s22 = smov 768   ;;  %s1485_s23 = smov 48  }
  0x12   :  { %22 = dma.hbm_to_vmem [thread:$0]  %s1676_s0, 12288, %s17_s13, [#allocation4], %s1484_s22, %s1484_s22, %s1485_s23  }
  0x13   :  { %s1486_s26 = smov [#allocation6]   ;;  %s1433_s30 = scalar_lea.hbm %s1677_s1, 12288 }
  0x14   :  { %s28_s27 = sshll.u32 %s1486_s26, 4  ;;  %p1434_p8 = scmp.ne.s32.totalorder %s1677_s1, %s1433_s30  ;;  %s29_s27 = int_to_ptr.vmem [resolvable:$true] %s28_s27 }
  0x15   :  { %p1437_p9 = scmp.lt.u32.totalorder %s1433_s30, %s1677_s1 }
  0x17   :  { %p1439_p10 = pnand %p1437_p9, %p1434_p8 }
  0x19   :  { %1442 = shalt.err (!%p1439_p10)
}
  0x1a   :  { %s1443_s8 = scalar_lea.vmem %s29_s27, 12288  ;;  %p1448_p12 = scmp.lt.s32.totalorder %s29_s27, %s29_s27 }
  0x1b   :  { %p1444_p11 = scmp.ne.s32.totalorder %s29_s27, %s1443_s8  ;;  %p1449_p13 = scmp.lt.s32.totalorder %s1443_s8, %s1443_s8 }
  0x1d   :  { %p1450_p0 = por %p1449_p13, %p1448_p12 }
  0x1f   :  { %p1451_p1 = pnand %p1450_p0, %p1444_p11 }
  0x21   :  { %1454 = shalt.err (!%p1451_p1)
}
  0x22   :  { %s1487_s0 = smov 128   ;;  %s1488_s9 = smov 8  }
  0x23   :  { %34 = dma.hbm_to_vmem [thread:$0]  %s1677_s1, 12288, %s29_s27, [#allocation7], %s1487_s0, %s1487_s0, %s1488_s9  }
  0x24   :  { %1477 = dma.done.wait [#allocation4], 12288  }
  0x25   :  { %1478 = vsyncadd [#allocation4], 4294955008 }
  0x26   :  { %1479 = dma.done.wait [#allocation7], 12288  }
  0x27   :  { %1480 = vsyncadd [#allocation7], 4294955008  ;;  %v191_v0 = vld [vmem:[#allocation6 + $0x80] sm:$0xff]  ;;  %v192_v1 = vld [vmem:[#allocation6 + $0x88] sm:$0xff]  ;;  %vm1490_vm0 = vmmov 0   ;;  %s1492_s13 = smov [#allocation8]  }
  0x28   :  { %v175_v2 = vld [vmem:[#allocation6] sm:$0xff]  ;;  %v1233_v3 = vpack.c.bf16 %v192_v1, %v191_v0  ;;  %v176_v4 = vld [vmem:[#allocation6 + $0x8] sm:$0xff]  ;;  %v193_v5 = vld [vmem:[#allocation6 + $0x90] sm:$0xff]  ;;  %s931_s14 = sshll.u32 %s1492_s13, 4  ;;  %s932_s14 = int_to_ptr.vmem [resolvable:$true] %s931_s14 }
  0x29   :  { %v194_v6 = vld [vmem:[#allocation6 + $0x98] sm:$0xff]  ;;  %v1235_v7 = vpack.c.bf16 %v176_v4, %v175_v2  ;;  %v177_v9 = vld [vmem:[#allocation6 + $0x10] sm:$0xff]  ;;  %v195_v11 = vld [vmem:[#allocation6 + $0xa0] sm:$0xff]  ;;  %s1455_s15 = scalar_lea.vmem %s932_s14, 16  ;;  %s1459_s16 = scalar_lea.vmem %s932_s14, 32 }
  0x2a   :  { %v1237_v8 = vpack.c.bf16 %v194_v6, %v193_v5  ;;  %v178_v10 = vld [vmem:[#allocation6 + $0x18] sm:$0xff]  ;;  %1353 = vmatprep.subr.bf16.mxu1 %v1233_v3  ;;  %1234 = vmatprep.subr.bf16.mxu0 %v1233_v3  ;;  %v196_v12 = vld [vmem:[#allocation6 + $0xa8] sm:$0xff]  ;;  %v179_v15 = vld [vmem:[#allocation6 + $0x20] sm:$0xff]  ;;  %p1456_p2 = scmp.ne.s32.totalorder %s932_s14, %s1455_s15  ;;  %p1460_p3 = scmp.lt.s32.totalorder %s932_s14, %s932_s14 }
  0x2b   :  { %1361 = vmatpush3.bf16.msra.mxu1 %v1235_v7  ;;  %1236 = vmatpush3.bf16.msra.mxu0 %v1235_v7  ;;  %v1239_v13 = vpack.c.bf16 %v178_v10, %v177_v9  ;;  %v1241_v14 = vpack.c.bf16 %v196_v12, %v195_v11  ;;  %v180_v16 = vld [vmem:[#allocation6 + $0x28] sm:$0xff]  ;;  %v197_v17 = vld [vmem:[#allocation6 + $0xb0] sm:$0xff]  ;;  %v198_v18 = vld [vmem:[#allocation6 + $0xb8] sm:$0xff]  ;;  %p1461_p4 = scmp.lt.s32.totalorder %s1459_s16, %s1455_s15 }
  0x2c   :  { %1354 = vmatprep.subr.bf16.mxu1 %v1237_v8  ;;  %1238 = vmatprep.subr.bf16.mxu0 %v1237_v8  ;;  %v1243_v19 = vpack.c.bf16 %v180_v16, %v179_v15  ;;  %v1245_v20 = vpack.c.bf16 %v198_v18, %v197_v17  ;;  %v181_v21 = vld [vmem:[#allocation6 + $0x30] sm:$0xff]  ;;  %v182_v22 = vld [vmem:[#allocation6 + $0x38] sm:$0xff]  ;;  %v199_v23 = vld [vmem:[#allocation6 + $0xc0] sm:$0xff] }
  0x2d   :  { %v200_v24 = vld [vmem:[#allocation6 + $0xc8] sm:$0xff]  ;;  %v1247_v27 = vpack.c.bf16 %v182_v22, %v181_v21  ;;  %v183_v29 = vld [vmem:[#allocation6 + $0x40] sm:$0xff]  ;;  %v201_v31 = vld [vmem:[#allocation6 + $0xd0] sm:$0xff]  ;;  %p1462_p5 = por %p1461_p4, %p1460_p3 }
  0x2e   :  { %v128_v25 = vld [vmem:[#allocation3 + $0x188] sm:$0xff]  ;;  %v1249_v28 = vpack.c.bf16 %v200_v24, %v199_v23  ;;  %v202_v32 = vld [vmem:[#allocation6 + $0xd8] sm:$0xff]  ;;  %v185_v35 = vld [vmem:[#allocation6 + $0x50] sm:$0xff] }
  0x2f   :  { %1362 = vmatpush3.bf16.msra.mxu1 %v1239_v13  ;;  %1240 = vmatpush3.bf16.msra.mxu0 %v1239_v13  ;;  %v80_v26 = vld [vmem:[#allocation3 + $0x8] sm:$0xff]  ;;  %v1253_v34 = vpack.c.bf16 %v202_v32, %v201_v31  ;;  %v186_v36 = vld [vmem:[#allocation6 + $0x58] sm:$0xff]  ;;  %v203_v37 = vld [vmem:[#allocation6 + $0xe0] sm:$0xff]  ;;  %p1463_p6 = pnand %p1462_p5, %p1456_p2 }
  0x30   :  { %1355 = vmatprep.subr.bf16.mxu1 %v1241_v14  ;;  %1242 = vmatprep.subr.bf16.mxu0 %v1241_v14  ;;  %v184_v30 = vld [vmem:[#allocation6 + $0x48] sm:$0xff]  ;;  %v1255_v39 = vpack.c.bf16 %v186_v36, %v185_v35  ;;  %v187_v41 = vld [vmem:[#allocation6 + $0x60] sm:$0xff]  ;;  %v205_v43 = vld [vmem:[#allocation6 + $0xf0] sm:$0xff] }
  0x31   :  { %375 = vmatprep.mubr.f32.mxu1 %v128_v25  ;;  %335 = vmatprep.mubr.f32.mxu0 %v80_v26  ;;  %v1251_v33 = vpack.c.bf16 %v184_v30, %v183_v29  ;;  %v204_v38 = vld [vmem:[#allocation6 + $0xe8] sm:$0xff]  ;;  %v206_v44 = vld [vmem:[#allocation6 + $0xf8] sm:$0xff]  ;;  %v189_v47 = vld [vmem:[#allocation6 + $0x70] sm:$0xff] }
  0x32   :  { %v1257_v40 = vpack.c.bf16 %v204_v38, %v203_v37  ;;  %v188_v42 = vld [vmem:[#allocation6 + $0x68] sm:$0xff]  ;;  %v1261_v46 = vpack.c.bf16 %v206_v44, %v205_v43  ;;  %v190_v48 = vld [vmem:[#allocation6 + $0x78] sm:$0xff]  ;;  %v223_v49 = vld [vmem:[#allocation6 + $0x180] sm:$0xff] }
  0x33   :  { %1363 = vmatpush3.bf16.msra.mxu1 %v1243_v19  ;;  %1244 = vmatpush3.bf16.msra.mxu0 %v1243_v19  ;;  %v1259_v45 = vpack.c.bf16 %v188_v42, %v187_v41  ;;  %v224_v50 = vld [vmem:[#allocation6 + $0x188] sm:$0xff]  ;;  %v255_v51 = vld [vmem:[#allocation6 + $0x280] sm:$0xff]  ;;  %v1263_v53 = vpack.c.bf16 %v190_v48, %v189_v47  ;;  %v225_v60 = vld [vmem:[#allocation6 + $0x190] sm:$0xff] }
  0x34   :  { %1356 = vmatprep.subr.bf16.mxu1 %v1245_v20  ;;  %1246 = vmatprep.subr.bf16.mxu0 %v1245_v20  ;;  %v256_v52 = vld [vmem:[#allocation6 + $0x288] sm:$0xff]  ;;  %v207_v54 = vld [vmem:[#allocation6 + $0x100] sm:$0xff]  ;;  %v1265_v55 = vpack.c.bf16 %v224_v50, %v223_v49  ;;  %v226_v61 = vld [vmem:[#allocation6 + $0x198] sm:$0xff] }
  0x35   :  { %v208_v56 = vld [vmem:[#allocation6 + $0x108] sm:$0xff]  ;;  %v1297_v57 = vpack.c.bf16 %v256_v52, %v255_v51  ;;  %v239_v58 = vld [vmem:[#allocation6 + $0x200] sm:$0xff]  ;;  %v257_v62 = vld [vmem:[#allocation6 + $0x290] sm:$0xff]  ;;  %v1269_v10 = vpack.c.bf16 %v226_v61, %v225_v60 }
  0x36   :  { %v240_v59 = vld [vmem:[#allocation6 + $0x208] sm:$0xff]  ;;  %v258_v63 = vld [vmem:[#allocation6 + $0x298] sm:$0xff]  ;;  %v127_v0 = vld [vmem:[#allocation3 + $0x180] sm:$0xff]  ;;  %v1267_v2 = vpack.c.bf16 %v208_v56, %v207_v54 }
  0x37   :  { %1364 = vmatpush3.bf16.msra.mxu1 %v1247_v27  ;;  %1248 = vmatpush3.bf16.msra.mxu0 %v1247_v27  ;;  %v79_v1 = vld [vmem:[#allocation3] sm:$0xff]  ;;  %v1299_v3 = vpack.c.bf16 %v240_v59, %v239_v58  ;;  %v209_v4 = vld [vmem:[#allocation6 + $0x110] sm:$0xff]  ;;  %v210_v5 = vld [vmem:[#allocation6 + $0x118] sm:$0xff]  ;;  %v1301_v11 = vpack.c.bf16 %v258_v63, %v257_v62 }
  0x38   :  { %1357 = vmatprep.subr.bf16.mxu1 %v1249_v28  ;;  %1250 = vmatprep.subr.bf16.mxu0 %v1249_v28  ;;  %v241_v6 = vld [vmem:[#allocation6 + $0x210] sm:$0xff]  ;;  %v242_v7 = vld [vmem:[#allocation6 + $0x218] sm:$0xff]  ;;  %v227_v12 = vld [vmem:[#allocation6 + $0x1a0] sm:$0xff]  ;;  %v1271_v18 = vpack.c.bf16 %v210_v5, %v209_v4 }
  0x39   :  { %v134_v8 = vld [vmem:[#allocation3 + $0x1b8] sm:$0xff]  ;;  %v228_v13 = vld [vmem:[#allocation6 + $0x1a8] sm:$0xff]  ;;  %v259_v14 = vld [vmem:[#allocation6 + $0x2a0] sm:$0xff]  ;;  %v1303_v19 = vpack.c.bf16 %v242_v7, %v241_v6 }
  0x3a   :  { %v86_v9 = vld [vmem:[#allocation3 + $0x38] sm:$0xff]  ;;  %v260_v15 = vld [vmem:[#allocation6 + $0x2a8] sm:$0xff]  ;;  %v133_v16 = vld [vmem:[#allocation3 + $0x1b0] sm:$0xff]  ;;  %v1273_v26 = vpack.c.bf16 %v228_v13, %v227_v12 }
  0x3b   :  { %1365 = vmatpush3.bf16.msra.mxu1 %v1251_v33  ;;  %1252 = vmatpush3.bf16.msra.mxu0 %v1251_v33  ;;  %v85_v17 = vld [vmem:[#allocation3 + $0x30] sm:$0xff]  ;;  %v211_v20 = vld [vmem:[#allocation6 + $0x120] sm:$0xff]  ;;  %v212_v21 = vld [vmem:[#allocation6 + $0x128] sm:$0xff]  ;;  %v1305_v27 = vpack.c.bf16 %v260_v15, %v259_v14 }
  0x3c   :  { %1358 = vmatprep.subr.bf16.mxu1 %v1253_v34  ;;  %1254 = vmatprep.subr.bf16.mxu0 %v1253_v34  ;;  %v243_v22 = vld [vmem:[#allocation6 + $0x220] sm:$0xff]  ;;  %v244_v23 = vld [vmem:[#allocation6 + $0x228] sm:$0xff]  ;;  %v229_v28 = vld [vmem:[#allocation6 + $0x1b0] sm:$0xff]  ;;  %v1275_v34 = vpack.c.bf16 %v212_v21, %v211_v20 }
  0x3d   :  { %v140_v24 = vld [vmem:[#allocation3 + $0x1e8] sm:$0xff]  ;;  %v230_v29 = vld [vmem:[#allocation6 + $0x1b8] sm:$0xff]  ;;  %v261_v30 = vld [vmem:[#allocation6 + $0x2b0] sm:$0xff]  ;;  %v1307_v35 = vpack.c.bf16 %v244_v23, %v243_v22 }
  0x3e   :  { %v92_v25 = vld [vmem:[#allocation3 + $0x68] sm:$0xff]  ;;  %v262_v31 = vld [vmem:[#allocation6 + $0x2b8] sm:$0xff]  ;;  %v139_v32 = vld [vmem:[#allocation3 + $0x1e0] sm:$0xff]  ;;  %v1277_v42 = vpack.c.bf16 %v230_v29, %v229_v28 }
  0x3f   :  { %1366 = vmatpush3.bf16.msra.mxu1 %v1255_v39  ;;  %1256 = vmatpush3.bf16.msra.mxu0 %v1255_v39  ;;  %v91_v33 = vld [vmem:[#allocation3 + $0x60] sm:$0xff]  ;;  %v213_v36 = vld [vmem:[#allocation6 + $0x130] sm:$0xff]  ;;  %v214_v37 = vld [vmem:[#allocation6 + $0x138] sm:$0xff]  ;;  %v1309_v43 = vpack.c.bf16 %v262_v31, %v261_v30 }
  0x40   :  { %1359 = vmatprep.subr.bf16.mxu1 %v1257_v40  ;;  %1258 = vmatprep.subr.bf16.mxu0 %v1257_v40  ;;  %v245_v38 = vld [vmem:[#allocation6 + $0x230] sm:$0xff]  ;;  %v246_v39 = vld [vmem:[#allocation6 + $0x238] sm:$0xff]  ;;  %v231_v44 = vld [vmem:[#allocation6 + $0x1c0] sm:$0xff]  ;;  %v1279_v50 = vpack.c.bf16 %v214_v37, %v213_v36 }
  0x41   :  { %v146_v40 = vld [vmem:[#allocation3 + $0x218] sm:$0xff]  ;;  %v264_v47 = vld [vmem:[#allocation6 + $0x2c8] sm:$0xff]  ;;  %v145_v48 = vld [vmem:[#allocation3 + $0x210] sm:$0xff]  ;;  %v1311_v51 = vpack.c.bf16 %v246_v39, %v245_v38 }
  0x42   :  { %v98_v41 = vld [vmem:[#allocation3 + $0x98] sm:$0xff]  ;;  %v97_v49 = vld [vmem:[#allocation3 + $0x90] sm:$0xff]  ;;  %v215_v52 = vld [vmem:[#allocation6 + $0x140] sm:$0xff] }
  0x43   :  { %1367 = vmatpush3.bf16.msra.mxu1 %v1259_v45  ;;  %1260 = vmatpush3.bf16.msra.mxu0 %v1259_v45  ;;  %v232_v45 = vld [vmem:[#allocation6 + $0x1c8] sm:$0xff]  ;;  %v247_v54 = vld [vmem:[#allocation6 + $0x240] sm:$0xff]  ;;  %v233_v60 = vld [vmem:[#allocation6 + $0x1d0] sm:$0xff] }
  0x44   :  { %1360 = vmatprep.subr.bf16.mxu1 %v1261_v46  ;;  %1262 = vmatprep.subr.bf16.mxu0 %v1261_v46  ;;  %v263_v46 = vld [vmem:[#allocation6 + $0x2c0] sm:$0xff]  ;;  %v152_v56 = vld [vmem:[#allocation3 + $0x248] sm:$0xff]  ;;  %v1281_v58 = vpack.c.bf16 %v232_v45, %v231_v44  ;;  %v234_v61 = vld [vmem:[#allocation6 + $0x1d8] sm:$0xff] }
  0x45   :  { %v1313_v59 = vpack.c.bf16 %v264_v47, %v263_v46  ;;  %v265_v62 = vld [vmem:[#allocation6 + $0x2d0] sm:$0xff]  ;;  %v266_v63 = vld [vmem:[#allocation6 + $0x2d8] sm:$0xff]  ;;  %v235_v12 = vld [vmem:[#allocation6 + $0x1e0] sm:$0xff] }
  0x46   :  { %v217_v4 = vld [vmem:[#allocation6 + $0x150] sm:$0xff]  ;;  %v218_v5 = vld [vmem:[#allocation6 + $0x158] sm:$0xff]  ;;  %v236_v13 = vld [vmem:[#allocation6 + $0x1e8] sm:$0xff] }
  0x47   :  { %1368 = vmatpush3.bf16.msra.mxu1 %v1263_v53  ;;  %1264 = vmatpush3.bf16.msra.mxu0 %v1263_v53  ;;  %v216_v53 = vld [vmem:[#allocation6 + $0x148] sm:$0xff]  ;;  %v249_v6 = vld [vmem:[#allocation6 + $0x250] sm:$0xff]  ;;  %v250_v7 = vld [vmem:[#allocation6 + $0x258] sm:$0xff] }
  0x48   :  { %1266 = vmatprep.subr.bf16.mxu1 %v1265_v55  ;;  %1298 = vmatprep.subr.bf16.mxu0 %v1297_v57  ;;  %v248_v55 = vld [vmem:[#allocation6 + $0x248] sm:$0xff]  ;;  %v267_v14 = vld [vmem:[#allocation6 + $0x2e0] sm:$0xff]  ;;  %v237_v28 = vld [vmem:[#allocation6 + $0x1f0] sm:$0xff] }
  0x49   :  { %v104_v57 = vld [vmem:[#allocation3 + $0xc8] sm:$0xff]  ;;  %v219_v20 = vld [vmem:[#allocation6 + $0x160] sm:$0xff]  ;;  %v238_v29 = vld [vmem:[#allocation6 + $0x1f8] sm:$0xff] }
  0x4a   :  { %376 = vmatmul.mubr.f32.vlgmr.msra.gmra.mrb[0].mxu1 %v127_v0  ;;  %336 = vmatmul.mubr.f32.vlgmr.msra.gmra.mrb[0].mxu0 %v79_v1  ;;  %v151_v0 = vld [vmem:[#allocation3 + $0x240] sm:$0xff]  ;;  %v268_v15 = vld [vmem:[#allocation6 + $0x2e8] sm:$0xff]  ;;  %v269_v30 = vld [vmem:[#allocation6 + $0x2f0] sm:$0xff] }
  0x4b   :  { %1268 = vmatpush3.bf16.msra.mxu1 %v1267_v2  ;;  %1300 = vmatpush3.bf16.msra.mxu0 %v1299_v3  ;;  %v103_v1 = vld [vmem:[#allocation3 + $0xc0] sm:$0xff]  ;;  %v1283_v2 = vpack.c.bf16 %v216_v53, %v215_v52  ;;  %v1315_v3 = vpack.c.bf16 %v248_v55, %v247_v54  ;;  %v220_v21 = vld [vmem:[#allocation6 + $0x168] sm:$0xff]  ;;  %v270_v31 = vld [vmem:[#allocation6 + $0x2f8] sm:$0xff] }
  0x4c   :  { %380 = vmatprep.mubr.f32.mxu1 %v134_v8  ;;  %340 = vmatprep.mubr.f32.mxu0 %v86_v9  ;;  %v158_v8 = vld [vmem:[#allocation3 + $0x278] sm:$0xff]  ;;  %v251_v22 = vld [vmem:[#allocation6 + $0x260] sm:$0xff]  ;;  %v252_v23 = vld [vmem:[#allocation6 + $0x268] sm:$0xff] }
  0x4d   :  { %1270 = vmatprep.subr.bf16.mxu1 %v1269_v10  ;;  %1302 = vmatprep.subr.bf16.mxu0 %v1301_v11  ;;  %v110_v9 = vld [vmem:[#allocation3 + $0xf8] sm:$0xff]  ;;  %v1285_v10 = vpack.c.bf16 %v234_v61, %v233_v60  ;;  %v1317_v11 = vpack.c.bf16 %v266_v63, %v265_v62  ;;  %v221_v36 = vld [vmem:[#allocation6 + $0x170] sm:$0xff]  ;;  %v88_v52 = vld [vmem:[#allocation3 + $0x48] sm:$0xff] }
  0x4e   :  { %381 = vmatmul.mubr.f32.gmra.mrb[2].mxu1 %v133_v16  ;;  %341 = vmatmul.mubr.f32.gmra.mrb[2].mxu0 %v85_v17  ;;  %v157_v16 = vld [vmem:[#allocation3 + $0x270] sm:$0xff]  ;;  %v222_v37 = vld [vmem:[#allocation6 + $0x178] sm:$0xff]  ;;  %v87_v54 = vld [vmem:[#allocation3 + $0x40] sm:$0xff] }
  0x4f   :  { %1272 = vmatpush3.bf16.msra.mxu1 %v1271_v18  ;;  %1304 = vmatpush3.bf16.msra.mxu0 %v1303_v19  ;;  %v109_v17 = vld [vmem:[#allocation3 + $0xf0] sm:$0xff]  ;;  %v1287_v18 = vpack.c.bf16 %v218_v5, %v217_v4  ;;  %v1319_v19 = vpack.c.bf16 %v250_v7, %v249_v6  ;;  %v254_v39 = vld [vmem:[#allocation6 + $0x278] sm:$0xff]  ;;  %v1295_v46 = vpack.c.bf16 %v222_v37, %v221_v36  ;;  %v100_v60 = vld [vmem:[#allocation3 + $0xa8] sm:$0xff] }
  0x50   :  { %385 = vmatprep.mubr.f32.mxu1 %v140_v24  ;;  %345 = vmatprep.mubr.f32.mxu0 %v92_v25  ;;  %v164_v24 = vld [vmem:[#allocation3 + $0x2a8] sm:$0xff]  ;;  %v253_v38 = vld [vmem:[#allocation6 + $0x270] sm:$0xff]  ;;  %v90_v53 = vld [vmem:[#allocation3 + $0x58] sm:$0xff] }
  0x51   :  { %1274 = vmatprep.subr.bf16.mxu1 %v1273_v26  ;;  %1306 = vmatprep.subr.bf16.mxu0 %v1305_v27  ;;  %v116_v25 = vld [vmem:[#allocation3 + $0x128] sm:$0xff]  ;;  %v1289_v26 = vpack.c.bf16 %v236_v13, %v235_v12  ;;  %v1321_v27 = vpack.c.bf16 %v268_v15, %v267_v14  ;;  %v169_v44 = vld [vmem:[#allocation3 + $0x2d0] sm:$0xff]  ;;  %v1327_v47 = vpack.c.bf16 %v254_v39, %v253_v38  ;;  %v102_v61 = vld [vmem:[#allocation3 + $0xb8] sm:$0xff] }
  0x52   :  { %386 = vmatmul.mubr.f32.gmra.mrb[4].mxu1 %v139_v32  ;;  %346 = vmatmul.mubr.f32.gmra.mrb[4].mxu0 %v91_v33  ;;  %v163_v32 = vld [vmem:[#allocation3 + $0x2a0] sm:$0xff]  ;;  %v121_v45 = vld [vmem:[#allocation3 + $0x150] sm:$0xff]  ;;  %v112_v4 = vld [vmem:[#allocation3 + $0x108] sm:$0xff] }
  0x53   :  { %1276 = vmatpush3.bf16.msra.mxu1 %v1275_v34  ;;  %1308 = vmatpush3.bf16.msra.mxu0 %v1307_v35  ;;  %v115_v33 = vld [vmem:[#allocation3 + $0x120] sm:$0xff]  ;;  %v1291_v34 = vpack.c.bf16 %v220_v21, %v219_v20  ;;  %v1323_v35 = vpack.c.bf16 %v252_v23, %v251_v22  ;;  %v89_v55 = vld [vmem:[#allocation3 + $0x50] sm:$0xff]  ;;  %v114_v5 = vld [vmem:[#allocation3 + $0x118] sm:$0xff] }
  0x54   :  { %390 = vmatprep.mubr.f32.mxu1 %v146_v40  ;;  %350 = vmatprep.mubr.f32.mxu0 %v98_v41  ;;  %v170_v40 = vld [vmem:[#allocation3 + $0x2d8] sm:$0xff]  ;;  %v99_v62 = vld [vmem:[#allocation3 + $0xa0] sm:$0xff]  ;;  %v101_v63 = vld [vmem:[#allocation3 + $0xb0] sm:$0xff] }
  0x55   :  { %1278 = vmatprep.subr.bf16.mxu1 %v1277_v42  ;;  %1310 = vmatprep.subr.bf16.mxu0 %v1309_v43  ;;  %v122_v41 = vld [vmem:[#allocation3 + $0x158] sm:$0xff]  ;;  %v1293_v42 = vpack.c.bf16 %v238_v29, %v237_v28  ;;  %v1325_v43 = vpack.c.bf16 %v270_v31, %v269_v30  ;;  %v111_v6 = vld [vmem:[#allocation3 + $0x100] sm:$0xff]  ;;  %v113_v7 = vld [vmem:[#allocation3 + $0x110] sm:$0xff] }
  0x56   :  { %391 = vmatmul.mubr.f32.gmra.mrb[6].mxu1 %v145_v48  ;;  %351 = vmatmul.mubr.f32.gmra.mrb[6].mxu0 %v97_v49  ;;  %v82_v48 = vld [vmem:[#allocation3 + $0x18] sm:$0xff]  ;;  %v84_v49 = vld [vmem:[#allocation3 + $0x28] sm:$0xff]  ;;  %v123_v14 = vld [vmem:[#allocation3 + $0x160] sm:$0xff] }
  0x57   :  { %1280 = vmatpush3.bf16.msra.mxu1 %v1279_v50  ;;  %1312 = vmatpush3.bf16.msra.mxu0 %v1311_v51  ;;  %v81_v50 = vld [vmem:[#allocation3 + $0x10] sm:$0xff]  ;;  %v83_v51 = vld [vmem:[#allocation3 + $0x20] sm:$0xff]  ;;  %v124_v12 = vld [vmem:[#allocation3 + $0x168] sm:$0xff] }
  0x58   :  { %395 = vmatprep.mubr.f32.mxu1 %v152_v56  ;;  %355 = vmatprep.mubr.f32.mxu0 %v104_v57  ;;  %v94_v56 = vld [vmem:[#allocation3 + $0x78] sm:$0xff]  ;;  %v96_v57 = vld [vmem:[#allocation3 + $0x88] sm:$0xff]  ;;  %v125_v15 = vld [vmem:[#allocation3 + $0x170] sm:$0xff] }
  0x59   :  { %1282 = vmatprep.subr.bf16.mxu1 %v1281_v58  ;;  %1314 = vmatprep.subr.bf16.mxu0 %v1313_v59  ;;  %v93_v58 = vld [vmem:[#allocation3 + $0x70] sm:$0xff]  ;;  %v95_v59 = vld [vmem:[#allocation3 + $0x80] sm:$0xff]  ;;  %v126_v13 = vld [vmem:[#allocation3 + $0x178] sm:$0xff] }
  0x5a   :  { %396 = vmatmul.mubr.f32.gmra.mrb[8].mxu1 %v151_v0  ;;  %356 = vmatmul.mubr.f32.gmra.mrb[8].mxu0 %v103_v1  ;;  %v106_v0 = vld [vmem:[#allocation3 + $0xd8] sm:$0xff]  ;;  %v108_v1 = vld [vmem:[#allocation3 + $0xe8] sm:$0xff]  ;;  %v135_v22 = vld [vmem:[#allocation3 + $0x1c0] sm:$0xff] }
  0x5b   :  { %1284 = vmatpush3.bf16.msra.mxu1 %v1283_v2  ;;  %1316 = vmatpush3.bf16.msra.mxu0 %v1315_v3  ;;  %v105_v2 = vld [vmem:[#allocation3 + $0xd0] sm:$0xff]  ;;  %v107_v3 = vld [vmem:[#allocation3 + $0xe0] sm:$0xff]  ;;  %v136_v20 = vld [vmem:[#allocation3 + $0x1c8] sm:$0xff] }
  0x5c   :  { %400 = vmatprep.mubr.f32.mxu1 %v158_v8  ;;  %360 = vmatprep.mubr.f32.mxu0 %v110_v9  ;;  %v118_v8 = vld [vmem:[#allocation3 + $0x138] sm:$0xff]  ;;  %v120_v9 = vld [vmem:[#allocation3 + $0x148] sm:$0xff]  ;;  %v137_v23 = vld [vmem:[#allocation3 + $0x1d0] sm:$0xff] }
  0x5d   :  { %1286 = vmatprep.subr.bf16.mxu1 %v1285_v10  ;;  %1318 = vmatprep.subr.bf16.mxu0 %v1317_v11  ;;  %v117_v10 = vld [vmem:[#allocation3 + $0x130] sm:$0xff]  ;;  %v119_v11 = vld [vmem:[#allocation3 + $0x140] sm:$0xff]  ;;  %v138_v21 = vld [vmem:[#allocation3 + $0x1d8] sm:$0xff] }
  0x5e   :  { %401 = vmatmul.mubr.f32.gmra.mrb[10].mxu1 %v157_v16  ;;  %361 = vmatmul.mubr.f32.gmra.mrb[10].mxu0 %v109_v17  ;;  %v130_v16 = vld [vmem:[#allocation3 + $0x198] sm:$0xff]  ;;  %v132_v17 = vld [vmem:[#allocation3 + $0x1a8] sm:$0xff]  ;;  %v147_v30 = vld [vmem:[#allocation3 + $0x220] sm:$0xff] }
  0x5f   :  { %1288 = vmatpush3.bf16.msra.mxu1 %v1287_v18  ;;  %1320 = vmatpush3.bf16.msra.mxu0 %v1319_v19  ;;  %v129_v18 = vld [vmem:[#allocation3 + $0x190] sm:$0xff]  ;;  %v131_v19 = vld [vmem:[#allocation3 + $0x1a0] sm:$0xff]  ;;  %v148_v28 = vld [vmem:[#allocation3 + $0x228] sm:$0xff] }
  0x60   :  { %405 = vmatprep.mubr.f32.mxu1 %v164_v24  ;;  %365 = vmatprep.mubr.f32.mxu0 %v116_v25  ;;  %v142_v24 = vld [vmem:[#allocation3 + $0x1f8] sm:$0xff]  ;;  %v144_v25 = vld [vmem:[#allocation3 + $0x208] sm:$0xff]  ;;  %v149_v31 = vld [vmem:[#allocation3 + $0x230] sm:$0xff] }
  0x61   :  { %1290 = vmatprep.subr.bf16.mxu1 %v1289_v26  ;;  %1322 = vmatprep.subr.bf16.mxu0 %v1321_v27  ;;  %v141_v26 = vld [vmem:[#allocation3 + $0x1f0] sm:$0xff]  ;;  %v143_v27 = vld [vmem:[#allocation3 + $0x200] sm:$0xff]  ;;  %v150_v29 = vld [vmem:[#allocation3 + $0x238] sm:$0xff] }
  0x62   :  { %406 = vmatmul.mubr.f32.gmra.mrb[12].mxu1 %v163_v32  ;;  %366 = vmatmul.mubr.f32.gmra.mrb[12].mxu0 %v115_v33  ;;  %v154_v32 = vld [vmem:[#allocation3 + $0x258] sm:$0xff]  ;;  %v156_v33 = vld [vmem:[#allocation3 + $0x268] sm:$0xff]  ;;  %v159_v38 = vld [vmem:[#allocation3 + $0x280] sm:$0xff] }
  0x63   :  { %1292 = vmatpush3.bf16.msra.mxu1 %v1291_v34  ;;  %1324 = vmatpush3.bf16.msra.mxu0 %v1323_v35  ;;  %v153_v34 = vld [vmem:[#allocation3 + $0x250] sm:$0xff]  ;;  %v155_v35 = vld [vmem:[#allocation3 + $0x260] sm:$0xff]  ;;  %v160_v36 = vld [vmem:[#allocation3 + $0x288] sm:$0xff] }
  0x64   :  { %410 = vmatprep.mubr.f32.mxu1 %v170_v40  ;;  %370 = vmatprep.mubr.f32.mxu0 %v122_v41  ;;  %v162_v37 = vld [vmem:[#allocation3 + $0x298] sm:$0xff]  ;;  %v161_v39 = vld [vmem:[#allocation3 + $0x290] sm:$0xff]  ;;  %v168_v41 = vld [vmem:[#allocation3 + $0x2c8] sm:$0xff] }
  0x65   :  { %1294 = vmatprep.subr.bf16.mxu1 %v1293_v42  ;;  %1326 = vmatprep.subr.bf16.mxu0 %v1325_v43  ;;  %v166_v40 = vld [vmem:[#allocation3 + $0x2b8] sm:$0xff]  ;;  %v165_v42 = vld [vmem:[#allocation3 + $0x2b0] sm:$0xff]  ;;  %v167_v43 = vld [vmem:[#allocation3 + $0x2c0] sm:$0xff] }
  0x66   :  { %411 = vmatmul.mubr.f32.gmra.mrb[14].mxu1 %v169_v44  ;;  %371 = vmatmul.mubr.f32.gmra.mrb[14].mxu0 %v121_v45  ;;  %v172_v44 = vld [vmem:[#allocation3 + $0x2e8] sm:$0xff]  ;;  %v174_v45 = vld [vmem:[#allocation3 + $0x2f8] sm:$0xff] }
  0x67   :  { %1296 = vmatpush3.bf16.msra.mxu1 %v1295_v46  ;;  %1328 = vmatpush3.bf16.msra.mxu0 %v1327_v47  ;;  %v171_v46 = vld [vmem:[#allocation3 + $0x2e0] sm:$0xff]  ;;  %v173_v47 = vld [vmem:[#allocation3 + $0x2f0] sm:$0xff] }
  0x68   :  { %480 = vmatprep.mubr.f32.mxu1 %v82_v48  ;;  %625 = vmatprep.mubr.f32.mxu0 %v84_v49 }
  0x6a   :  { %481 = vmatmul.mubr.f32.vlgmr.msra.gmra.mrb[16].mxu1 %v81_v50  ;;  %626 = vmatmul.mubr.f32.vlgmr.msra.gmra.mrb[16].mxu0 %v83_v51 }
  0x6b   :  { %485 = vmatprep.mubr.f32.mxu1 %v88_v52  ;;  %630 = vmatprep.mubr.f32.mxu0 %v90_v53 }
  0x6e   :  { %486 = vmatmul.mubr.f32.gmra.mrb[18].mxu1 %v87_v54  ;;  %631 = vmatmul.mubr.f32.gmra.mrb[18].mxu0 %v89_v55 }
  0x6f   :  { %490 = vmatprep.mubr.f32.mxu1 %v94_v56  ;;  %635 = vmatprep.mubr.f32.mxu0 %v96_v57 }
  0x72   :  { %491 = vmatmul.mubr.f32.gmra.mrb[20].mxu1 %v93_v58  ;;  %636 = vmatmul.mubr.f32.gmra.mrb[20].mxu0 %v95_v59 }
  0x73   :  { %495 = vmatprep.mubr.f32.mxu1 %v100_v60  ;;  %640 = vmatprep.mubr.f32.mxu0 %v102_v61 }
  0x76   :  { %496 = vmatmul.mubr.f32.gmra.mrb[22].mxu1 %v99_v62  ;;  %641 = vmatmul.mubr.f32.gmra.mrb[22].mxu0 %v101_v63 }
  0x77   :  { %500 = vmatprep.mubr.f32.mxu1 %v106_v0  ;;  %645 = vmatprep.mubr.f32.mxu0 %v108_v1 }
  0x7a   :  { %501 = vmatmul.mubr.f32.gmra.mrb[24].mxu1 %v105_v2  ;;  %646 = vmatmul.mubr.f32.gmra.mrb[24].mxu0 %v107_v3 }
  0x7b   :  { %505 = vmatprep.mubr.f32.mxu1 %v112_v4  ;;  %650 = vmatprep.mubr.f32.mxu0 %v114_v5 }
  0x7e   :  { %506 = vmatmul.mubr.f32.gmra.mrb[26].mxu1 %v111_v6  ;;  %651 = vmatmul.mubr.f32.gmra.mrb[26].mxu0 %v113_v7 }
  0x7f   :  { %510 = vmatprep.mubr.f32.mxu1 %v118_v8  ;;  %655 = vmatprep.mubr.f32.mxu0 %v120_v9 }
  0x82   :  { %511 = vmatmul.mubr.f32.gmra.mrb[28].mxu1 %v117_v10  ;;  %656 = vmatmul.mubr.f32.gmra.mrb[28].mxu0 %v119_v11 }
  0x83   :  { %515 = vmatprep.mubr.f32.mxu1 %v124_v12  ;;  %660 = vmatprep.mubr.f32.mxu0 %v126_v13 }
  0x86   :  { %516 = vmatmul.mubr.f32.gmra.mrb[30].mxu1 %v123_v14  ;;  %661 = vmatmul.mubr.f32.gmra.mrb[30].mxu0 %v125_v15 }
  0x87   :  { %520 = vmatprep.mubr.f32.mxu1 %v130_v16  ;;  %665 = vmatprep.mubr.f32.mxu0 %v132_v17 }
  0x8a   :  { %521 = vmatmul.mubr.f32.gmra.mrb[32].mxu1 %v129_v18  ;;  %666 = vmatmul.mubr.f32.gmra.mrb[32].mxu0 %v131_v19 }
  0x8b   :  { %525 = vmatprep.mubr.f32.mxu1 %v136_v20  ;;  %670 = vmatprep.mubr.f32.mxu0 %v138_v21 }
  0x8e   :  { %526 = vmatmul.mubr.f32.gmra.mrb[34].mxu1 %v135_v22  ;;  %671 = vmatmul.mubr.f32.gmra.mrb[34].mxu0 %v137_v23 }
  0x8f   :  { %530 = vmatprep.mubr.f32.mxu1 %v142_v24  ;;  %675 = vmatprep.mubr.f32.mxu0 %v144_v25 }
  0x92   :  { %531 = vmatmul.mubr.f32.gmra.mrb[36].mxu1 %v141_v26  ;;  %676 = vmatmul.mubr.f32.gmra.mrb[36].mxu0 %v143_v27 }
  0x93   :  { %535 = vmatprep.mubr.f32.mxu1 %v148_v28  ;;  %680 = vmatprep.mubr.f32.mxu0 %v150_v29 }
  0x96   :  { %536 = vmatmul.mubr.f32.gmra.mrb[38].mxu1 %v147_v30  ;;  %681 = vmatmul.mubr.f32.gmra.mrb[38].mxu0 %v149_v31 }
  0x97   :  { %540 = vmatprep.mubr.f32.mxu1 %v154_v32  ;;  %685 = vmatprep.mubr.f32.mxu0 %v156_v33 }
  0x9a   :  { %541 = vmatmul.mubr.f32.gmra.mrb[40].mxu1 %v153_v34  ;;  %686 = vmatmul.mubr.f32.gmra.mrb[40].mxu0 %v155_v35 }
  0x9b   :  { %545 = vmatprep.mubr.f32.mxu1 %v160_v36  ;;  %690 = vmatprep.mubr.f32.mxu0 %v162_v37 }
  0x9e   :  { %546 = vmatmul.mubr.f32.gmra.mrb[42].mxu1 %v159_v38  ;;  %691 = vmatmul.mubr.f32.gmra.mrb[42].mxu0 %v161_v39 }
  0x9f   :  { %550 = vmatprep.mubr.f32.mxu1 %v166_v40  ;;  %695 = vmatprep.mubr.f32.mxu0 %v168_v41 }
  0xa2   :  { %551 = vmatmul.mubr.f32.gmra.mrb[44].mxu1 %v165_v42  ;;  %696 = vmatmul.mubr.f32.gmra.mrb[44].mxu0 %v167_v43 }
  0xa3   :  { %555 = vmatprep.mubr.f32.mxu1 %v172_v44  ;;  %700 = vmatprep.mubr.f32.mxu0 %v174_v45 }
  0xa6   :  { %556 = vmatmul.mubr.f32.gmra.mrb[46].mxu1 %v171_v46  ;;  %701 = vmatmul.mubr.f32.gmra.mrb[46].mxu0 %v173_v47 }
 0x11d   :  { %v997_v48 = vpop.f32.mrb[0].mxu1  ;;  %v973_v49 = vpop.f32.mrb[0].mxu0 }
 0x11e   :  { %v998_v50 = vpop.f32.mrb[1].mxu1  ;;  %v974_v51 = vpop.f32.mrb[1].mxu0 }
 0x11f   :  { %v1537_v52 = vadd.f32 %v998_v50, %v997_v48  ;;  %v975_v53 = vadd.f32 %v974_v51, %v973_v49 }
 0x121   :  { %v1000_v54 = vpop.f32.mrb[2].mxu1  ;;  %v976_v55 = vpop.f32.mrb[2].mxu0 }
 0x122   :  { %v1001_v56 = vpop.f32.mrb[3].mxu1  ;;  %v977_v57 = vpop.f32.mrb[3].mxu0 }
 0x123   :  { %v1539_v58 = vadd.f32 %v1001_v56, %v1000_v54  ;;  %v978_v59 = vadd.f32 %v977_v57, %v976_v55 }
 0x125   :  { %v1003_v60 = vpop.f32.mrb[4].mxu1  ;;  %v979_v61 = vpop.f32.mrb[4].mxu0 }
 0x126   :  { %v1004_v62 = vpop.f32.mrb[5].mxu1  ;;  %v980_v63 = vpop.f32.mrb[5].mxu0 }
 0x127   :  { %v1541_v0 = vadd.f32 %v1004_v62, %v1003_v60  ;;  %v981_v1 = vadd.f32 %v980_v63, %v979_v61 }
 0x129   :  { %v1006_v2 = vpop.f32.mrb[6].mxu1  ;;  %v982_v3 = vpop.f32.mrb[6].mxu0 }
 0x12a   :  { %v1007_v4 = vpop.f32.mrb[7].mxu1  ;;  %v983_v5 = vpop.f32.mrb[7].mxu0 }
 0x12b   :  { %v1543_v6 = vadd.f32 %v1007_v4, %v1006_v2  ;;  %v984_v7 = vadd.f32 %v983_v5, %v982_v3 }
 0x12d   :  { %v1009_v8 = vpop.f32.mrb[8].mxu1  ;;  %v985_v9 = vpop.f32.mrb[8].mxu0 }
 0x12e   :  { %v1010_v10 = vpop.f32.mrb[9].mxu1  ;;  %v986_v11 = vpop.f32.mrb[9].mxu0 }
 0x12f   :  { %v1545_v12 = vadd.f32 %v1010_v10, %v1009_v8  ;;  %v1547_v13 = vadd.f32 %v986_v11, %v985_v9 }
 0x131   :  { %v1012_v14 = vpop.f32.mrb[10].mxu1  ;;  %v988_v15 = vpop.f32.mrb[10].mxu0 }
 0x132   :  { %v1013_v16 = vpop.f32.mrb[11].mxu1  ;;  %v989_v17 = vpop.f32.mrb[11].mxu0 }
 0x133   :  { %v1549_v18 = vadd.f32 %v1013_v16, %v1012_v14  ;;  %v1551_v19 = vadd.f32 %v989_v17, %v988_v15 }
 0x135   :  { %v1015_v20 = vpop.f32.mrb[12].mxu1  ;;  %v991_v21 = vpop.f32.mrb[12].mxu0 }
 0x136   :  { %v1016_v22 = vpop.f32.mrb[13].mxu1  ;;  %v992_v23 = vpop.f32.mrb[13].mxu0 }
 0x137   :  { %v1553_v24 = vadd.f32 %v1016_v22, %v1015_v20  ;;  %v1555_v25 = vadd.f32 %v992_v23, %v991_v21 }
 0x139   :  { %v1018_v26 = vpop.f32.mrb[14].mxu1  ;;  %v994_v27 = vpop.f32.mrb[14].mxu0 }
 0x13a   :  { %v1019_v28 = vpop.f32.mrb[15].mxu1  ;;  %v995_v29 = vpop.f32.mrb[15].mxu0 }
 0x13b   :  { %v1557_v30 = vadd.f32 %v1019_v28, %v1018_v26  ;;  %v1559_v31 = vadd.f32 %v995_v29, %v994_v27 }
 0x13d   :  { %v1053_v32 = vpop.f32.mrb[16].mxu1  ;;  %v1133_v33 = vpop.f32.mrb[16].mxu0 }
 0x13e   :  { %v1054_v34 = vpop.f32.mrb[17].mxu1  ;;  %v1134_v35 = vpop.f32.mrb[17].mxu0 }
 0x13f   :  { %v1055_v36 = vadd.f32 %v1054_v34, %v1053_v32  ;;  %v1135_v37 = vadd.f32 %v1134_v35, %v1133_v33 }
 0x141   :  { %v483_v38 = vadd.f32 %v1055_v36, %v975_v53  ;;  %v1056_v39 = vpop.f32.mrb[18].mxu1  ;;  %v1136_v40 = vpop.f32.mrb[18].mxu0 }
 0x142   :  { %v1057_v41 = vpop.f32.mrb[19].mxu1  ;;  %v1137_v42 = vpop.f32.mrb[19].mxu0 }
 0x143   :  { %v1058_v43 = vadd.f32 %v1057_v41, %v1056_v39  ;;  %v1138_v44 = vadd.f32 %v1137_v42, %v1136_v40  ;;  %v1561_v45 = vadd.f32 %v1135_v37, %v483_v38 }
 0x145   :  { %v488_v46 = vadd.f32 %v1058_v43, %v978_v59  ;;  %v1059_v47 = vpop.f32.mrb[20].mxu1  ;;  %v1139_v48 = vpop.f32.mrb[20].mxu0  ;;  %v757_v49 = vmul.f32 %v1561_v45, %v1561_v45 }
 0x146   :  { %v1060_v50 = vpop.f32.mrb[21].mxu1  ;;  %v1140_v51 = vpop.f32.mrb[21].mxu0 }
 0x147   :  { %v1565_v54 = vadd.f32 %v1138_v44, %v488_v46  ;;  %v1061_v55 = vadd.f32 %v1060_v50, %v1059_v47  ;;  %v1141_v53 = vadd.f32 %v1140_v51, %v1139_v48  ;;  %773 = vadd.xlane.f32.xlu0 %v757_v49 }
 0x149   :  { %v493_v56 = vadd.f32 %v1061_v55, %v981_v1  ;;  %v1062_v57 = vpop.f32.mrb[22].mxu1  ;;  %v1142_v60 = vpop.f32.mrb[22].mxu0  ;;  %v758_v61 = vmul.f32 %v1565_v54, %v1565_v54 }
 0x14a   :  { %v1063_v62 = vpop.f32.mrb[23].mxu1  ;;  %v1143_v59 = vpop.f32.mrb[23].mxu0 }
 0x14b   :  { %v1064_v63 = vadd.f32 %v1063_v62, %v1062_v57  ;;  %v1144_v2 = vadd.f32 %v1143_v59, %v1142_v60  ;;  %775 = vadd.xlane.f32.xlu0 %v758_v61  ;;  %v1569_v3 = vadd.f32 %v1141_v53, %v493_v56 }
 0x14d   :  { %v498_v4 = vadd.f32 %v1064_v63, %v984_v7  ;;  %v1065_v5 = vpop.f32.mrb[24].mxu1  ;;  %v1145_v8 = vpop.f32.mrb[24].mxu0  ;;  %v759_v9 = vmul.f32 %v1569_v3, %v1569_v3 }
 0x14e   :  { %v1066_v10 = vpop.f32.mrb[25].mxu1  ;;  %v1146_v1 = vpop.f32.mrb[25].mxu0 }
 0x14f   :  { %v1573_v11 = vadd.f32 %v1144_v2, %v498_v4  ;;  %v1067_v14 = vadd.f32 %v1066_v10, %v1065_v5  ;;  %v1147_v15 = vadd.f32 %v1146_v1, %v1145_v8  ;;  %777 = vadd.xlane.f32.xlu1 %v759_v9 }
 0x151   :  { %v503_v16 = vadd.f32 %v1067_v14, %v1547_v13  ;;  %v1068_v17 = vpop.f32.mrb[26].mxu1  ;;  %v1148_v20 = vpop.f32.mrb[26].mxu0  ;;  %v760_v21 = vmul.f32 %v1573_v11, %v1573_v11 }
 0x152   :  { %v1069_v7 = vpop.f32.mrb[27].mxu1  ;;  %v1149_v22 = vpop.f32.mrb[27].mxu0 }
 0x153   :  { %v1578_v23 = vadd.f32 %v1147_v15, %v503_v16  ;;  %v1070_v26 = vadd.f32 %v1069_v7, %v1068_v17  ;;  %v1150_v27 = vadd.f32 %v1149_v22, %v1148_v20  ;;  %779 = vadd.xlane.f32.xlu1 %v760_v21 }
 0x155   :  { %v508_v28 = vadd.f32 %v1070_v26, %v1551_v19  ;;  %v1071_v29 = vpop.f32.mrb[28].mxu1  ;;  %v1151_v32 = vpop.f32.mrb[28].mxu0  ;;  %v761_v33 = vmul.f32 %v1578_v23, %v1578_v23 }
 0x156   :  { %v1072_v13 = vpop.f32.mrb[29].mxu1  ;;  %v1152_v34 = vpop.f32.mrb[29].mxu0 }
 0x157   :  { %v1583_v35 = vadd.f32 %v1150_v27, %v508_v28  ;;  %v1073_v36 = vadd.f32 %v1072_v13, %v1071_v29  ;;  %v1153_v37 = vadd.f32 %v1152_v34, %v1151_v32  ;;  %781 = vadd.xlane.f32.xlu0 %v761_v33 }
 0x159   :  { %v513_v38 = vadd.f32 %v1073_v36, %v1555_v25  ;;  %v1074_v39 = vpop.f32.mrb[30].mxu1  ;;  %v1154_v40 = vpop.f32.mrb[30].mxu0  ;;  %v762_v41 = vmul.f32 %v1583_v35, %v1583_v35 }
 0x15a   :  { %v1075_v19 = vpop.f32.mrb[31].mxu1  ;;  %v1155_v42 = vpop.f32.mrb[31].mxu0 }
 0x15b   :  { %v1588_v43 = vadd.f32 %v1153_v37, %v513_v38  ;;  %v1076_v44 = vadd.f32 %v1075_v19, %v1074_v39  ;;  %v1156_v46 = vadd.f32 %v1155_v42, %v1154_v40  ;;  %783 = vadd.xlane.f32.xlu1 %v762_v41 }
 0x15d   :  { %v518_v47 = vadd.f32 %v1076_v44, %v1559_v31  ;;  %v1077_v48 = vpop.f32.mrb[32].mxu1  ;;  %v1157_v49 = vpop.f32.mrb[32].mxu0  ;;  %v763_v50 = vmul.f32 %v1588_v43, %v1588_v43 }
 0x15e   :  { %v1078_v25 = vpop.f32.mrb[33].mxu1  ;;  %v1158_v51 = vpop.f32.mrb[33].mxu0 }
 0x15f   :  { %v1593_v55 = vadd.f32 %v1156_v46, %v518_v47  ;;  %v1079_v53 = vadd.f32 %v1078_v25, %v1077_v48  ;;  %v1159_v56 = vadd.f32 %v1158_v51, %v1157_v49  ;;  %785 = vadd.xlane.f32.xlu0 %v763_v50 }
 0x161   :  { %v523_v57 = vadd.f32 %v1079_v53, %v1537_v52  ;;  %v1080_v60 = vpop.f32.mrb[34].mxu1  ;;  %v1160_v61 = vpop.f32.mrb[34].mxu0  ;;  %v764_v62 = vmul.f32 %v1593_v55, %v1593_v55 }
 0x162   :  { %v1081_v31 = vpop.f32.mrb[35].mxu1  ;;  %v1161_v59 = vpop.f32.mrb[35].mxu0 }
 0x163   :  { %v1598_v63 = vadd.f32 %v1159_v56, %v523_v57  ;;  %v1082_v2 = vadd.f32 %v1081_v31, %v1080_v60  ;;  %v1162_v4 = vadd.f32 %v1161_v59, %v1160_v61  ;;  %787 = vadd.xlane.f32.xlu1 %v764_v62 }
 0x165   :  { %v528_v5 = vadd.f32 %v1082_v2, %v1539_v58  ;;  %v1083_v8 = vpop.f32.mrb[36].mxu1  ;;  %v1163_v9 = vpop.f32.mrb[36].mxu0  ;;  %v765_v10 = vmul.f32 %v1598_v63, %v1598_v63  ;;  %v1489_v58 = vmov 0.0|0.0  }
 0x166   :  { %v1084_v52 = vpop.f32.mrb[37].mxu1  ;;  %v1164_v1 = vpop.f32.mrb[37].mxu0  ;;  %1329 = vmatprep.subr.bf16.mxu1 %v1489_v58 }
 0x167   :  { %v1603_v14 = vadd.f32 %v1162_v4, %v528_v5  ;;  %v1085_v15 = vadd.f32 %v1084_v52, %v1083_v8  ;;  %v1165_v16 = vadd.f32 %v1164_v1, %v1163_v9  ;;  %789 = vadd.xlane.f32.xlu0 %v765_v10  ;;  %v1491_v1 = vmov 0.0  }
 0x168   :  { %1230 = vmatprep.mubr.msk.f32.mxu1 %vm1490_vm0, %v1491_v1 }
 0x169   :  { %v533_v17 = vadd.f32 %v1085_v15, %v1541_v0  ;;  %v1086_v20 = vpop.f32.mrb[38].mxu1  ;;  %v1166_v21 = vpop.f32.mrb[38].mxu0  ;;  %v766_v7 = vmul.f32 %v1603_v14, %v1603_v14 }
 0x16a   :  { %v1087_v22 = vpop.f32.mrb[39].mxu1  ;;  %v1167_v26 = vpop.f32.mrb[39].mxu0 }
 0x16b   :  { %v1609_v27 = vadd.f32 %v1165_v16, %v533_v17  ;;  %v1088_v28 = vadd.f32 %v1087_v22, %v1086_v20  ;;  %v1168_v29 = vadd.f32 %v1167_v26, %v1166_v21  ;;  %791 = vadd.xlane.f32.xlu1 %v766_v7 }
 0x16d   :  { %v538_v32 = vadd.f32 %v1088_v28, %v1543_v6  ;;  %v1089_v33 = vpop.f32.mrb[40].mxu1  ;;  %v1169_v13 = vpop.f32.mrb[40].mxu0  ;;  %v767_v0 = vmul.f32 %v1609_v27, %v1609_v27 }
 0x16e   :  { %v1090_v34 = vpop.f32.mrb[41].mxu1  ;;  %v1170_v36 = vpop.f32.mrb[41].mxu0 }
 0x16f   :  { %v1614_v37 = vadd.f32 %v1168_v29, %v538_v32  ;;  %v1091_v38 = vadd.f32 %v1090_v34, %v1089_v33  ;;  %v1171_v39 = vadd.f32 %v1170_v36, %v1169_v13  ;;  %793 = vadd.xlane.f32.xlu0 %v767_v0 }
 0x171   :  { %v543_v40 = vadd.f32 %v1091_v38, %v1545_v12  ;;  %v1092_v41 = vpop.f32.mrb[42].mxu1  ;;  %v1172_v19 = vpop.f32.mrb[42].mxu0  ;;  %v768_v42 = vmul.f32 %v1614_v37, %v1614_v37 }
 0x172   :  { %v1093_v6 = vpop.f32.mrb[43].mxu1  ;;  %v1173_v44 = vpop.f32.mrb[43].mxu0 }
 0x173   :  { %v1619_v46 = vadd.f32 %v1171_v39, %v543_v40  ;;  %v1094_v47 = vadd.f32 %v1093_v6, %v1092_v41  ;;  %v1174_v48 = vadd.f32 %v1173_v44, %v1172_v19  ;;  %795 = vadd.xlane.f32.xlu1 %v768_v42 }
 0x175   :  { %v548_v49 = vadd.f32 %v1094_v47, %v1549_v18  ;;  %v1095_v50 = vpop.f32.mrb[44].mxu1  ;;  %v1175_v25 = vpop.f32.mrb[44].mxu0  ;;  %v769_v51 = vmul.f32 %v1619_v46, %v1619_v46 }
 0x176   :  { %v1096_v12 = vpop.f32.mrb[45].mxu1  ;;  %v1176_v53 = vpop.f32.mrb[45].mxu0 }
 0x177   :  { %v1624_v56 = vadd.f32 %v1174_v48, %v548_v49  ;;  %v1097_v57 = vadd.f32 %v1096_v12, %v1095_v50  ;;  %v1177_v60 = vadd.f32 %v1176_v53, %v1175_v25  ;;  %797 = vadd.xlane.f32.xlu0 %v769_v51 }
 0x179   :  { %v553_v61 = vadd.f32 %v1097_v57, %v1553_v24  ;;  %v1098_v62 = vpop.f32.mrb[46].mxu1  ;;  %v1178_v31 = vpop.f32.mrb[46].mxu0  ;;  %v770_v59 = vmul.f32 %v1624_v56, %v1624_v56 }
 0x17a   :  { %v1099_v18 = vpop.f32.mrb[47].mxu1  ;;  %v1179_v2 = vpop.f32.mrb[47].mxu0 }
 0x17b   :  { %v1629_v4 = vadd.f32 %v1177_v60, %v553_v61  ;;  %v1100_v5 = vadd.f32 %v1099_v18, %v1098_v62  ;;  %v1180_v8 = vadd.f32 %v1179_v2, %v1178_v31  ;;  %799 = vadd.xlane.f32.xlu1 %v770_v59 }
 0x17d   :  { %v558_v9 = vadd.f32 %v1100_v5, %v1557_v30  ;;  %v771_v10 = vmul.f32 %v1629_v4, %v1629_v4 }
 0x17f   :  { %v1634_v52 = vadd.f32 %v1180_v8, %v558_v9  ;;  %801 = vadd.xlane.f32.xlu0 %v771_v10 }
 0x181   :  { %v772_v24 = vmul.f32 %v1634_v52, %v1634_v52 }
 0x183   :  { %803 = vadd.xlane.f32.xlu1 %v772_v24 }
 0x1d4   :  { %v774_v15 = vpop.xlane.xlu0 %773 }
 0x1d5   :  { %v805_v16 = vadd.f32 1e-12, %v774_v15 }
 0x1d7   :  { %1379 = vrsqrt.f32 %v805_v16 }
 0x1d8   :  { %v776_v17 = vpop.xlane.xlu0 %775 }
 0x1d9   :  { %v806_v20 = vadd.f32 1e-12, %v776_v17 }
 0x1db   :  { %1381 = vrsqrt.f32 %v806_v20 }
 0x1dc   :  { %v778_v30 = vpop.xlane.xlu1 %777 }
 0x1dd   :  { %v807_v21 = vadd.f32 1e-12, %v778_v30 }
 0x1df   :  { %1383 = vrsqrt.f32 %v807_v21 }
 0x1e0   :  { %v780_v7 = vpop.xlane.xlu1 %779 }
 0x1e1   :  { %v808_v22 = vadd.f32 1e-12, %v780_v7  ;;  %v1380_v26 = vpop.eup %1379 }
 0x1e2   :  { %v837_v33 = vmul.f32 %v1380_v26, %v1561_v45 }
 0x1e3   :  { %1385 = vrsqrt.f32 %v808_v22 }
 0x1e4   :  { %v782_v28 = vpop.xlane.xlu0 %781 }
 0x1e5   :  { %v1382_v29 = vpop.eup %1381  ;;  %v809_v32 = vadd.f32 1e-12, %v782_v28 }
 0x1e6   :  { %v838_v13 = vmul.f32 %v1382_v29, %v1565_v54 }
 0x1e7   :  { %1387 = vrsqrt.f32 %v809_v32 }
 0x1e8   :  { %v784_v0 = vpop.xlane.xlu1 %783  ;;  %v1330_v34 = vpack.c.bf16 %v838_v13, %v837_v33  ;;  %v853_v13 = vld [vmem:[%s1678_s2] sm:$0x1] }
 0x1e9   :  { %v810_v36 = vadd.f32 1e-12, %v784_v0  ;;  %v1384_v38 = vpop.eup %1383 }
 0x1ea   :  { %1331 = vmatpush3.bf16.xpose.msra.mxu1 %v1330_v34  ;;  %v839_v19 = vmul.f32 %v1384_v38, %v1569_v3 }
 0x1eb   :  { %1389 = vrsqrt.f32 %v810_v36  ;;  %1332 = vmatprep.subr.bf16.mxu1 %v1489_v58 }
 0x1ec   :  { %v786_v39 = vpop.xlane.xlu0 %785 }
 0x1ed   :  { %v1386_v40 = vpop.eup %1385  ;;  %v811_v41 = vadd.f32 1e-12, %v786_v39 }
 0x1ee   :  { %v840_v42 = vmul.f32 %v1386_v40, %v1573_v11 }
 0x1ef   :  { %1391 = vrsqrt.f32 %v811_v41 }
 0x1f0   :  { %v788_v6 = vpop.xlane.xlu1 %787  ;;  %v1333_v45 = vpack.c.bf16 %v840_v42, %v839_v19 }
 0x1f1   :  { %v812_v54 = vadd.f32 1e-12, %v788_v6  ;;  %v1388_v44 = vpop.eup %1387 }
 0x1f2   :  { %1334 = vmatpush3.bf16.xpose.msra.mxu1 %v1333_v45  ;;  %v841_v50 = vmul.f32 %v1388_v44, %v1578_v23 }
 0x1f3   :  { %1393 = vrsqrt.f32 %v812_v54  ;;  %1335 = vmatprep.subr.bf16.mxu1 %v1489_v58 }
 0x1f4   :  { %v790_v47 = vpop.xlane.xlu0 %789 }
 0x1f5   :  { %v1390_v48 = vpop.eup %1389  ;;  %v813_v49 = vadd.f32 1e-12, %v790_v47 }
 0x1f6   :  { %v842_v25 = vmul.f32 %v1390_v48, %v1583_v35 }
 0x1f7   :  { %1395 = vrsqrt.f32 %v813_v49 }
 0x1f8   :  { %v792_v51 = vpop.xlane.xlu1 %791  ;;  %v1336_v3 = vpack.c.bf16 %v842_v25, %v841_v50 }
 0x1f9   :  { %v814_v11 = vadd.f32 1e-12, %v792_v51  ;;  %v1392_v12 = vpop.eup %1391 }
 0x1fa   :  { %1337 = vmatpush3.bf16.xpose.msra.mxu1 %v1336_v3  ;;  %v843_v61 = vmul.f32 %v1392_v12, %v1588_v43 }
 0x1fb   :  { %1397 = vrsqrt.f32 %v814_v11  ;;  %1338 = vmatprep.subr.bf16.mxu1 %v1489_v58 }
 0x1fc   :  { %v794_v53 = vpop.xlane.xlu0 %793 }
 0x1fd   :  { %v1394_v57 = vpop.eup %1393  ;;  %v815_v60 = vadd.f32 1e-12, %v794_v53 }
 0x1fe   :  { %v844_v62 = vmul.f32 %v1394_v57, %v1593_v55 }
 0x1ff   :  { %1399 = vrsqrt.f32 %v815_v60 }
 0x200   :  { %v796_v31 = vpop.xlane.xlu1 %795  ;;  %v1339_v23 = vpack.c.bf16 %v844_v62, %v843_v61 }
 0x201   :  { %v816_v35 = vadd.f32 1e-12, %v796_v31  ;;  %v1396_v59 = vpop.eup %1395 }
 0x202   :  { %1340 = vmatpush3.bf16.xpose.msra.mxu1 %v1339_v23  ;;  %v845_v8 = vmul.f32 %v1396_v59, %v1598_v63 }
 0x203   :  { %1401 = vrsqrt.f32 %v816_v35  ;;  %1341 = vmatprep.subr.bf16.mxu1 %v1489_v58 }
 0x204   :  { %v798_v18 = vpop.xlane.xlu0 %797 }
 0x205   :  { %v1398_v2 = vpop.eup %1397  ;;  %v817_v5 = vadd.f32 1e-12, %v798_v18 }
 0x206   :  { %v846_v9 = vmul.f32 %v1398_v2, %v1603_v14 }
 0x207   :  { %1403 = vrsqrt.f32 %v817_v5 }
 0x208   :  { %v800_v10 = vpop.xlane.xlu1 %799  ;;  %v1342_v43 = vpack.c.bf16 %v846_v9, %v845_v8 }
 0x209   :  { %v818_v55 = vadd.f32 1e-12, %v800_v10  ;;  %v1400_v24 = vpop.eup %1399 }
 0x20a   :  { %1343 = vmatpush3.bf16.xpose.msra.mxu1 %v1342_v43  ;;  %v847_v17 = vmul.f32 %v1400_v24, %v1609_v27 }
 0x20b   :  { %1405 = vrsqrt.f32 %v818_v55  ;;  %1344 = vmatprep.subr.bf16.mxu1 %v1489_v58 }
 0x20c   :  { %v802_v1 = vpop.xlane.xlu0 %801 }
 0x20d   :  { %v1402_v15 = vpop.eup %1401  ;;  %v819_v16 = vadd.f32 1e-12, %v802_v1 }
 0x20e   :  { %v848_v20 = vmul.f32 %v1402_v15, %v1614_v37 }
 0x20f   :  { %1407 = vrsqrt.f32 %v819_v16 }
 0x210   :  { %v804_v30 = vpop.xlane.xlu1 %803  ;;  %v1345_v63 = vpack.c.bf16 %v848_v20, %v847_v17 }
 0x211   :  { %v820_v14 = vadd.f32 1e-12, %v804_v30  ;;  %v1404_v21 = vpop.eup %1403 }
 0x212   :  { %1346 = vmatpush3.bf16.xpose.msra.mxu1 %v1345_v63  ;;  %v849_v22 = vmul.f32 %v1404_v21, %v1619_v46 }
 0x213   :  { %1409 = vrsqrt.f32 %v820_v14  ;;  %1347 = vmatprep.subr.bf16.mxu1 %v1489_v58 }
 0x215   :  { %v1406_v7 = vpop.eup %1405 }
 0x216   :  { %v850_v26 = vmul.f32 %v1406_v7, %v1624_v56 }
 0x218   :  { %v1348_v28 = vpack.c.bf16 %v850_v26, %v849_v22 }
 0x219   :  { %v1408_v29 = vpop.eup %1407 }
 0x21a   :  { %1349 = vmatpush3.bf16.xpose.msra.mxu1 %v1348_v28  ;;  %v851_v37 = vmul.f32 %v1408_v29, %v1629_v4 }
 0x21b   :  { %1350 = vmatprep.subr.bf16.mxu1 %v1489_v58 }
 0x21d   :  { %v1410_v27 = vpop.eup %1409 }
 0x21e   :  { %v852_v32 = vmul.f32 %v1410_v27, %v1634_v52 }
 0x220   :  { %v1351_v33 = vpack.c.bf16 %v852_v32, %v851_v37 }
 0x222   :  { %1352 = vmatpush3.bf16.xpose.msra.mxu1 %v1351_v33 }
 0x229   :  { %1231 = vmatmul.mubr.f32.vlgmr.msra.gmra.mrb[48].mxu1 %v853_v13 }
 0x2fc   :  { %v920_v46 = vpop.f32.mrb[48].mxu1 }
 0x2fd   :  { %924 = vst [vmem:[#allocation8] sm:$0x1] %v920_v46  ;;  %v1232_v56 = vpop.f32.mrb[49].mxu1 }
 0x2fe   :  { %1466 = shalt.err (!%p1463_p6)
}
 0x2ff   :  { %s1467_s19 = scalar_lea.hbm %s1679_s3, 16 }
 0x300   :  { %p1468_p7 = scmp.ne.s32.totalorder %s1679_s3, %s1467_s19  ;;  %p1471_p8 = scmp.lt.u32.totalorder %s1467_s19, %s1679_s3 }
 0x302   :  { %p1473_p9 = pnand %p1471_p8, %p1468_p7 }
 0x304   :  { %1476 = shalt.err (!%p1473_p9)
}
 0x305   :  { %934 = dma.vmem_to_hbm [thread:$0]  %s932_s14, 16, %s1679_s3, [#allocation5]  }
 0x306   :  { %1481 = dma.done.wait [#allocation5], 16  }
 0x307   :  { %1482 = vsyncadd [#allocation5], 4294967280 }
 0x308   :  { %938 = vsyncpa [#allocation4], 1 }
 0x309   :  { %939 = vsyncpa [#allocation7], 1 }
 0x30a   :  { %940 = vsyncpa [#allocation5], 1 }

</bundles_post_ra>
